<compile_context>
chip_gen: v5e
topology: v5e:2x2
jax: 0.10.0
libtpu: 0.0.40
codegen_flags: <defaults>
</compile_context>

<pallas_src>
import functools

import jax
import jax.numpy as jnp
from jax import lax
from jax.experimental import pallas as pl
from jax.experimental.pallas import tpu as pltpu


def _round_up(x, m):
    return ((x + m - 1) // m) * m


def conv2d_block_forward(x_nchw, weight_oihw, bias, *, stride, padding, tm=512):
    """ZeroPad2d(padding) -> Conv2d(stride, bias) -> ReLU.  NCHW in / NCHW out."""
    N, Cin, H, W = x_nchw.shape
    Cout, Cin_w, KH, KW = weight_oihw.shape
    assert Cin == Cin_w

    Hp, Wp = H + 2 * padding, W + 2 * padding
    Ho = (Hp - KH) // stride + 1
    Wo = (Wp - KW) // stride + 1
    assert Ho >= 1 and Wo >= 1

    M_img = Hp * Wp                          # anchor positions per padded image
    max_shift = (KH - 1) * Wp + (KW - 1)     # largest tap offset on the flat axis
    Kt = KH * KW * Cin

    # Pixel-tile size: multiple of 128 (lane-dense output), at least one halo,
    # and not (much) bigger than the image itself.
    tm = max(128, min(tm, _round_up(M_img, 128)))
    tm = _round_up(tm, 128)
    tm = max(tm, _round_up(max(max_shift, 1), 128))

    T = -(-M_img // tm)                      # pixel tiles per image
    M_pad = T * tm
    L = (T + 1) * tm                         # +1 zero tile so the halo read of the
                                             # last tile stays in bounds

    # --- glue (one cheap pass): zero pad, flatten spatial, pad flat tail ---
    xb = x_nchw.astype(jnp.bfloat16)
    xp = jnp.pad(xb, ((0, 0), (0, 0), (padding, padding), (padding, padding)))
    xf = xp.reshape(N, Cin, M_img)
    xf = jnp.pad(xf, ((0, 0), (0, 0), (0, L - M_img)))          # (N, Cin, L) bf16

    # Weight flattened to match the in-kernel tap stacking order
    # (row index = tap*Cin + cin, tap = kh*KW + kw).
    w_flat = jnp.transpose(weight_oihw, (0, 2, 3, 1)).reshape(Cout, Kt)
    w_flat = w_flat.astype(jnp.bfloat16)                        # (Cout, Kt)
    b2d = bias.reshape(Cout, 1).astype(jnp.float32)             # (Cout, 1)

    shifts = tuple(kh * Wp + kw for kh in range(KH) for kw in range(KW))

    def kernel(xc_ref, xn_ref, w_ref, b_ref, o_ref):
        # xc_ref / xn_ref: (1, Cin, tm) bf16 -- current tile and next tile (halo).
        xc = xc_ref[0].astype(jnp.float32)
        xn = xn_ref[0].astype(jnp.float32)
        xfull = jnp.concatenate([xc, xn], axis=1)               # (Cin, 2*tm) f32
        # Fused im2col: each conv tap is a static lane shift of the flattened
        # padded image; stack the KH*KW shifted windows along the K axis.
        patches = jnp.concatenate(
            [xfull[:, s:s + tm] for s in shifts], axis=0)       # (Kt, tm) f32
        acc = jnp.dot(w_ref[...], patches.astype(jnp.bfloat16),
                      preferred_element_type=jnp.float32)       # (Cout, tm) f32
        acc = acc + b_ref[...]                                  # bias
        o_ref[0] = jnp.maximum(acc, 0.0).astype(o_ref.dtype)    # ReLU

    flops = 2 * N * M_pad * Kt * Cout
    bytes_accessed = (2 * N * Cin * L * 2          # both bf16 input streams
                      + Cout * Kt * 2 + Cout * 4   # weight + bias
                      + N * Cout * M_pad * 4)      # f32 output

    out_flat = pl.pallas_call(
        kernel,
        out_shape=jax.ShapeDtypeStruct((N, Cout, M_pad), jnp.float32),
        grid_spec=pltpu.PrefetchScalarGridSpec(
            num_scalar_prefetch=0,
            grid=(N, T),
            in_specs=[
                pl.BlockSpec((1, Cin, tm), lambda n, j: (n, 0, j)),      # tile j
                pl.BlockSpec((1, Cin, tm), lambda n, j: (n, 0, j + 1)),  # halo
                pl.BlockSpec((Cout, Kt), lambda n, j: (0, 0)),           # weight
                pl.BlockSpec((Cout, 1), lambda n, j: (0, 0)),            # bias
            ],
            out_specs=pl.BlockSpec((1, Cout, tm), lambda n, j: (n, 0, j)),
        ),
        compiler_params=pltpu.CompilerParams(
            dimension_semantics=("parallel", "parallel"),
            vmem_limit_bytes=32 * 1024 * 1024,
        ),
        cost_estimate=pl.CostEstimate(
            flops=flops, transcendentals=0, bytes_accessed=bytes_accessed),
    )(xf, xf, w_flat, b2d)

    # (N, Cout, M_pad) -> crop flat padding -> (N, Cout, Hp, Wp) -> keep only
    # valid conv anchors (strided).  Already NCHW, no transpose needed.
    out = out_flat[:, :, :M_img].reshape(N, Cout, Hp, Wp)
    out = out[:, :, 0:(Ho - 1) * stride + 1:stride,
                    0:(Wo - 1) * stride + 1:stride]
    return out


# ----------------------------------------------------------------------------
# Pure-JAX reference (mirrors nn.ZeroPad2d + nn.Conv2d(bias) + nn.ReLU)
# ----------------------------------------------------------------------------
def conv2d_block_reference(x_nchw, weight_oihw, bias, *, stride, padding):
    y = lax.conv_general_dilated(
        x_nchw, weight_oihw,
        window_strides=(stride, stride),
        padding=[(padding, padding), (padding, padding)],
        dimension_numbers=("NCHW", "OIHW", "NCHW"),
    )
    return jnp.maximum(y + bias.reshape(1, -1, 1, 1), 0.0)


if __name__ == "__main__":
    # Conv2dBlock(input_dim=4, output_dim=8, kernel_size=3, stride=1,
    #             padding=1, norm='none', activation='relu', pad_type='zero')
    N, Cin, H, W = 2, 4, 16, 16
    Cout, K, stride, padding = 8, 3, 1, 1

    key = jax.random.PRNGKey(0)
    kx, kw, kb = jax.random.split(key, 3)
    x = jax.random.normal(kx, (N, Cin, H, W), dtype=jnp.float32)
    weight = jax.random.normal(kw, (Cout, Cin, K, K), dtype=jnp.float32) * 0.1
    bias = jax.random.normal(kb, (Cout,), dtype=jnp.float32) * 0.1

    fwd = jax.jit(functools.partial(conv2d_block_forward,
                                    stride=stride, padding=padding))
    out = jax.block_until_ready(fwd(x, weight, bias))

    # Reference on the same bf16-rounded operands (the kernel feeds the MXU
    # bf16 inputs with f32 accumulation) -> tight tolerance.
    x_q = x.astype(jnp.bfloat16).astype(jnp.float32)
    w_q = weight.astype(jnp.bfloat16).astype(jnp.float32)
    ref = conv2d_block_reference(x_q, w_q, bias, stride=stride, padding=padding)

    assert out.shape == (N, Cout, H, W), out.shape
    max_err = float(jnp.max(jnp.abs(out - ref)))
    assert jnp.allclose(out, ref, atol=2e-3, rtol=2e-3), max_err

    # Informational only: deviation from the full-f32 reference comes purely
    # from the bf16 operand quantization requested by the perf review.
    ref_f32 = conv2d_block_reference(x, weight, bias, stride=stride, padding=padding)
    _ = float(jnp.max(jnp.abs(out - ref_f32)))

    print("KERNEL_OK")
</pallas_src>

<mosaic_0001>
module attributes {stable_mosaic.version = 11 : i64} {
  func.func @kernel(%arg0: i32, %arg1: i32, %arg2: memref<1x4x384xbf16, #tpu.memory_space<vmem>>, %arg3: memref<1x4x384xbf16, #tpu.memory_space<vmem>>, %arg4: memref<8x36xbf16, #tpu.memory_space<vmem>>, %arg5: memref<8x1xf32, #tpu.memory_space<vmem>>, %arg6: memref<1x8x384xf32, #tpu.memory_space<vmem>>) attributes {dimension_semantics = [#tpu.dimension_semantics<parallel>, #tpu.dimension_semantics<parallel>], iteration_bounds = array<i64: 2, 1>, scalar_prefetch = 0 : i64, scratch_operands = 0 : i64, tpu.core_type = #tpu.core_type<tc>, window_params = [{transform_indices = @transform_0, window_bounds = array<i64: 1, 4, 384>}, {transform_indices = @transform_1, window_bounds = array<i64: 1, 4, 384>}, {pipeline_mode = #tpu.pipeline_mode<synchronous>, transform_indices = @transform_2, window_bounds = array<i64: 8, 36>}, {pipeline_mode = #tpu.pipeline_mode<synchronous>, transform_indices = @transform_3, window_bounds = array<i64: 8, 1>}, {transform_indices = @transform_4, window_bounds = array<i64: 1, 8, 384>}]} {
    %c0 = arith.constant 0 : index
    %c0_0 = arith.constant 0 : index
    %c0_1 = arith.constant 0 : index
    %0 = vector.load %arg2[%c0, %c0_0, %c0_1] : memref<1x4x384xbf16, #tpu.memory_space<vmem>>, vector<1x4x384xbf16>
    %1 = vector.shape_cast %0 : vector<1x4x384xbf16> to vector<4x384xbf16>
    %2 = arith.extf %1 : vector<4x384xbf16> to vector<4x384xf32>
    %c0_2 = arith.constant 0 : index
    %c0_3 = arith.constant 0 : index
    %c0_4 = arith.constant 0 : index
    %3 = vector.load %arg3[%c0_2, %c0_3, %c0_4] : memref<1x4x384xbf16, #tpu.memory_space<vmem>>, vector<1x4x384xbf16>
    %4 = vector.shape_cast %3 : vector<1x4x384xbf16> to vector<4x384xbf16>
    %5 = arith.extf %4 : vector<4x384xbf16> to vector<4x384xf32>
    %6 = tpu.concatenate %2, %5 in 1 : vector<4x384xf32>, vector<4x384xf32> -> vector<4x768xf32>
    %7 = vector.extract_strided_slice %6 {offsets = [0, 0], sizes = [4, 384], strides = [1, 1]} : vector<4x768xf32> to vector<4x384xf32>
    %8 = vector.extract_strided_slice %6 {offsets = [0, 1], sizes = [4, 384], strides = [1, 1]} : vector<4x768xf32> to vector<4x384xf32>
    %9 = vector.extract_strided_slice %6 {offsets = [0, 2], sizes = [4, 384], strides = [1, 1]} : vector<4x768xf32> to vector<4x384xf32>
    %10 = vector.extract_strided_slice %6 {offsets = [0, 18], sizes = [4, 384], strides = [1, 1]} : vector<4x768xf32> to vector<4x384xf32>
    %11 = vector.extract_strided_slice %6 {offsets = [0, 19], sizes = [4, 384], strides = [1, 1]} : vector<4x768xf32> to vector<4x384xf32>
    %12 = vector.extract_strided_slice %6 {offsets = [0, 20], sizes = [4, 384], strides = [1, 1]} : vector<4x768xf32> to vector<4x384xf32>
    %13 = vector.extract_strided_slice %6 {offsets = [0, 36], sizes = [4, 384], strides = [1, 1]} : vector<4x768xf32> to vector<4x384xf32>
    %14 = vector.extract_strided_slice %6 {offsets = [0, 37], sizes = [4, 384], strides = [1, 1]} : vector<4x768xf32> to vector<4x384xf32>
    %15 = vector.extract_strided_slice %6 {offsets = [0, 38], sizes = [4, 384], strides = [1, 1]} : vector<4x768xf32> to vector<4x384xf32>
    %16 = tpu.concatenate %7, %8, %9, %10, %11, %12, %13, %14, %15 in 0 : vector<4x384xf32>, vector<4x384xf32>, vector<4x384xf32>, vector<4x384xf32>, vector<4x384xf32>, vector<4x384xf32>, vector<4x384xf32>, vector<4x384xf32>, vector<4x384xf32> -> vector<36x384xf32>
    %c0_5 = arith.constant 0 : index
    %c0_6 = arith.constant 0 : index
    %17 = vector.load %arg4[%c0_5, %c0_6] : memref<8x36xbf16, #tpu.memory_space<vmem>>, vector<8x36xbf16>
    %18 = arith.truncf %16 : vector<36x384xf32> to vector<36x384xbf16>
    %cst = arith.constant dense<0.000000e+00> : vector<8x384xf32>
    %19 = tpu.matmul %17, %18, %cst {dimension_numbers = #tpu.dot_dimension_numbers<[1], [0], [0], [1], [0, 0, 1, 1], [], []>} : vector<8x36xbf16>, vector<36x384xbf16>, vector<8x384xf32> -> vector<8x384xf32>
    %c0_7 = arith.constant 0 : index
    %c0_8 = arith.constant 0 : index
    %20 = vector.load %arg5[%c0_7, %c0_8] : memref<8x1xf32, #tpu.memory_space<vmem>>, vector<8x1xf32>
    %21 = vector.broadcast %20 : vector<8x1xf32> to vector<8x384xf32>
    %22 = arith.addf %19, %21 : vector<8x384xf32>
    %cst_9 = arith.constant 0.000000e+00 : f32
    %23 = vector.broadcast %cst_9 : f32 to vector<8x384xf32>
    %24 = arith.maximumf %22, %23 : vector<8x384xf32>
    %c0_10 = arith.constant 0 : index
    %c0_11 = arith.constant 0 : index
    %c0_12 = arith.constant 0 : index
    %25 = vector.load %arg6[%c0_10, %c0_11, %c0_12] : memref<1x8x384xf32, #tpu.memory_space<vmem>>, vector<1x8x384xf32>
    %26 = vector.shape_cast %25 : vector<1x8x384xf32> to vector<8x384xf32>
    %27 = vector.shape_cast %24 : vector<8x384xf32> to vector<1x8x384xf32>
    tpu.vector_store %arg6[%c0_10, %c0_11, %c0_12], %27 {strides = array<i32>} : memref<1x8x384xf32, #tpu.memory_space<vmem>>, vector<1x8x384xf32>,
    return
  }
  func.func @transform_0(%arg0: i32, %arg1: i32) -> (i32, i32, i32) {
    %c0_i32 = arith.constant 0 : i32
    %c0_i32_0 = arith.constant 0 : i32
    return %arg0, %c0_i32, %arg1 : i32, i32, i32
  }
  func.func @transform_1(%arg0: i32, %arg1: i32) -> (i32, i32, i32) {
    %c1_i32 = arith.constant 1 : i32
    %0 = arith.addi %arg1, %c1_i32 : i32
    %c0_i32 = arith.constant 0 : i32
    %c0_i32_0 = arith.constant 0 : i32
    return %arg0, %c0_i32, %0 : i32, i32, i32
  }
  func.func @transform_2(%arg0: i32, %arg1: i32) -> (i32, i32) {
    %c0_i32 = arith.constant 0 : i32
    %c0_i32_0 = arith.constant 0 : i32
    %c0_i32_1 = arith.constant 0 : i32
    return %c0_i32, %c0_i32_0 : i32, i32
  }
  func.func @transform_3(%arg0: i32, %arg1: i32) -> (i32, i32) {
    %c0_i32 = arith.constant 0 : i32
    %c0_i32_0 = arith.constant 0 : i32
    %c0_i32_1 = arith.constant 0 : i32
    return %c0_i32, %c0_i32_0 : i32, i32
  }
  func.func @transform_4(%arg0: i32, %arg1: i32) -> (i32, i32, i32) {
    %c0_i32 = arith.constant 0 : i32
    %c0_i32_0 = arith.constant 0 : i32
    return %arg0, %c0_i32, %arg1 : i32, i32, i32
  }
}

</mosaic_0001>

<bundles_post_ra>
// kernel: conv2d_block_forward.1
= control target key start
LH: loop header
LB: loop body
LE: loop exit
PB: predicated region body
PF: predicated region fallthrough
CT: control target
= control target key end

     0   :  { %s813_s15 = smov 0   ;;  %s815_s16 = smov 0   ;;  %s949_s0 = inlined_call_operand.vmem [shape: bf16[2,4,768], index: 0, kind: input, shape index: {}, may-alias: {0,1}]   ;;  %s950_s1 = inlined_call_operand.vmem [shape: bf16[2,4,768], index: 1, kind: input, shape index: {}, may-alias: {0,1}]   ;;  %s951_s2 = inlined_call_operand.vmem [shape: bf16[8,36], index: 2, kind: input, shape index: {}]   ;;  %s952_s3 = inlined_call_operand.vmem [shape: f32[8,1], index: 3, kind: input, shape index: {}]   ;;  %s953_s4 = inlined_call_operand.vmem [shape: f32[2,8,384], index: 4, kind: output, shape index: {}]  }
   0x1   :  { %s817_s17 = smov 0  }
   0x2 LB: > { %s26_s18 = sadd.s32 1, %s773_s16  ;;  %p625_p0 = scmp.ge.s32.totalorder %s777_s17, 1  ;;  %s777_s17 = sphi %s817_s17, %s14_s17   ;;  %s773_s16 = sphi %s815_s16, %s955_s16   ;;  %s769_s15 = sphi %s813_s15, %s954_s15  }
   0x3   : > { %p28_p1 = scmp.ge.s32.totalorder %s26_s18, 2  ;;  %p204_p2 = scmp.lt.s32.totalorder %s777_s17, 3 }
   0x5   : > { %s957_s18 = smov (%p28_p1, %s26_s18), 0  ;;  %p205_p3 = pnand %p625_p0, %p204_p2 }
   0x6   : > { %p249_p4 = scmp.lt.s32.totalorder (!%p205_p3), %s769_s15, 1  ;;  %s779_s27 = smov (!%p205_p3), 109  }
   0x7   : > { %208 = sbr.rel (%p205_p3) target bundleno = 327 (0x147), region = 36  ;;  %s780_s28 = smov (!%p205_p3), 90  }
   0x8   : > { %s781_s29 = smov (!%p205_p3), 92   ;;  %s782_s30 = smov (!%p205_p3), 126  }
   0x9   : > { %s783_s5 = smov (!%p205_p3), 91   ;;  %s784_s6 = smov (!%p205_p3), 127  }
   0xa   : > { %s785_s7 = smov (!%p205_p3), 108   ;;  %s786_s8 = smov (!%p205_p3), 110  }
   0xc   : > { %s959_s15 = smov (!%p249_p4, %s769_s15), 1  ;;  %vm421_vm0 = vcmask 736256   ;;  %vm461_vm1 = vcmask 1041408   ;;  %v451_v39 = vld [vmem:[%s952_s3] sm:$0xff]  ;;  %v787_v42 = vmov 0   ;;  %vm406_vm2 = vcmask 744448  }
   0xd   : > { %s636_s19 = smul.u32 12, %s959_s15  ;;  %753 = vset.pattern.permute.xlu1 %v787_v42  ;;  %754 = vset.pattern.permute.xlu0 %v787_v42  ;;  %vm391_vm3 = vcmask 752640   ;;  %vm428_vm4 = vcmask 1043456   ;;  %vm376_vm5 = vcmask 883712   ;;  %vm316_vm6 = vcmask 1039360  }
   0xe   : > { %vm331_vm7 = vcmask 1031168   ;;  %vm346_vm8 = vcmask 900096   ;;  %vm361_vm9 = vcmask 891904   ;;  %vm457_vm10 = vcmask 293888   ;;  %s638_s13 = smul.u32 24, %s959_s15 }
   0xf   : > { %s256_s22 = scalar_lea.vmem %s949_s0, %s636_s19  ;;  %s635_s23 = sadd.s32 6, %s636_s19 }
  0x10   : > { %v281_v0 = vld [vmem:[%s256_s22] sm:$0x3f]  ;;  %s267_s26 = scalar_lea.vmem %s950_s1, %s635_s23  ;;  %s278_s20 = scalar_lea.vmem %s953_s4, %s638_s13 }
  0x11   : > { %v282_v1 = vunpack.c.l.bf16 %v281_v0  ;;  %v283_v2 = vunpack.c.h.bf16 %v281_v0  ;;  %v284_v3 = vld [vmem:[%s267_s26] sm:$0x3f] }
  0x12   : > { %v285_v4 = vunpack.c.l.bf16 %v284_v3  ;;  %v286_v5 = vunpack.c.h.bf16 %v284_v3 }
  0x13   : > { %289 = vst [vmem:[#allocation1] ss:$2 sm:$0xff] %v282_v1 }
  0x14   : > { %291 = vst [vmem:[#allocation1 + $0x10] ss:$2 sm:$0xff] %v283_v2 }
  0x1a   : > { %v840_v6 = vld.sshfl [vmem:[#allocation1] sm:$0xff pattern:$0x75316420]  ;;  %v842_v7 = vld.sshfl [vmem:[#allocation1 + $0x8] sm:$0xff pattern:$0x75316420] }
  0x1b   : > { %v678_v8 = vpack.i.bf16 %v842_v7, %v840_v6  ;;  %300 = vst [vmem:[#allocation1] ss:$2 sm:$0xff] %v285_v4  ;;  %v846_v9 = vld.sshfl [vmem:[#allocation1 + $0x10] sm:$0xff pattern:$0x75316420]  ;;  %v304_v15 = vrot.slane %v840_v6, 4 }
  0x1c   : > { %302 = vst [vmem:[#allocation1 + $0x10] ss:$2 sm:$0xff] %v286_v5  ;;  %v306_v12 = vrot.slane %v846_v9, 4  ;;  %v305_v16 = vrot.slane %v842_v7, 4 }
  0x1d   : > { %679 = vrot.lane.b32.xlu0 %v678_v8, %s779_s27  ;;  %674 = vrot.lane.b32.xlu2 %v678_v8, %s780_s28 }
  0x1e   : > { %v728_v17 = vpack.i.bf16 %v305_v16, %v304_v15 }
  0x22   : > { %v303_v10 = vld.sshfl [vmem:[#allocation1] sm:$0xff pattern:$0x75316420] }
  0x23   : > { %v693_v11 = vpack.i.bf16 %v303_v10, %v846_v9  ;;  %v307_v13 = vrot.slane %v303_v10, 4 }
  0x25   : > { %694 = vrot.lane.b32.xlu1 %v693_v11, %s781_s29  ;;  %684 = vrot.lane.b32.xlu0 %v693_v11, %s780_s28  ;;  %v718_v14 = vpack.i.bf16 %v307_v13, %v306_v12 }
  0x26   : > { %714 = vrot.lane.b32.xlu2 %v678_v8, %s781_s29 }
  0x2d   : > { %699 = vrot.lane.b32.xlu1 %v693_v11, %s782_s30  ;;  %689 = vrot.lane.b32.xlu0 %v693_v11, %s779_s27 }
  0x2e   : > { %719 = vrot.lane.b32.xlu2 %v718_v14, %s783_s5 }
  0x35   : > { %724 = vrot.lane.b32.xlu0 %v718_v14, %s784_s6  ;;  %704 = vrot.lane.b32.xlu1 %v718_v14, %s785_s7 }
  0x36   : > { %739 = vrot.lane.b32.xlu2 %v718_v14, %s786_s8 }
  0x3d   : > { %729 = vrot.lane.b32.xlu0 %v728_v17, %s783_s5  ;;  %709 = vrot.lane.b32.xlu1 %v728_v17, %s785_s7 }
  0x3e   : > { %744 = vrot.lane.b32.xlu2 %v678_v8, %s782_s30 }
  0x45   : > { %749 = vrot.lane.b32.xlu0 %v728_v17, %s786_s8  ;;  %734 = vrot.lane.b32.xlu1 %v728_v17, %s784_s6 }
  0x4d   : > { %454 = vperm.xlu1 %753, %v451_v39  }
  0x77   : > { %v675_v18 = vpop.permute.xlu2 %674 }
  0x78   : > { %v677_v19 = vunpack.i.h.bf16 %v675_v18  ;;  %v676_v20 = vunpack.i.l.bf16 %v675_v18 }
  0x7a   : > { %v422_v21 = vsel %vm421_vm0, %v676_v20, %v677_v19 }
  0x7b   : > { %v448_v22 = vpack.c.bf16 %v422_v21, %v422_v21 }
  0x7d   : > { %v463_v23 = vsel %vm461_vm1, %v448_v22, 0 }
  0x7e   : > { %476 = vmatpush.bf16.msra.mxu0 %v463_v23 }
  0x80   : > { %v855_v25 = vpop.permute.xlu2 %714 }
  0x81   : > { %v716_v60 = vunpack.i.l.bf16 %v855_v25  ;;  %v717_v8 = vunpack.i.h.bf16 %v855_v25  ;;  %v441_v25 = vld [vmem:[%s951_s2] sm:$0xf] }
  0x83   : > { %v392_v16 = vsel %vm391_vm3, %v716_v60, %v717_v8 }
  0x88   : > { %v859_v32 = vpop.permute.xlu2 %719 }
  0x89   : > { %v722_v40 = vunpack.i.h.bf16 %v859_v32  ;;  %v721_v41 = vunpack.i.l.bf16 %v859_v32 }
  0x8b   : > { %v409_v49 = vsel %vm406_vm2, %v721_v41, %v722_v40 }
  0x8f   : > { %v853_v24 = vpop.permute.xlu0 %679 }
  0x90   : > { %v872_v45 = vpop.permute.xlu2 %739  ;;  %v682_v10 = vunpack.i.h.bf16 %v853_v24  ;;  %v681_v11 = vunpack.i.l.bf16 %v853_v24 }
  0x91   : > { %v742_v46 = vunpack.i.h.bf16 %v872_v45  ;;  %v741_v50 = vunpack.i.l.bf16 %v872_v45 }
  0x92   : > { %v362_v22 = vsel %vm361_vm9, %v681_v11, %v682_v10 }
  0x93   : > { %v349_v3 = vsel %vm346_vm8, %v741_v50, %v742_v46 }
  0x97   : > { %v857_v26 = vpop.permute.xlu1 %694  ;;  %v685_v27 = vpop.permute.xlu0 %684 }
  0x98   : > { %v687_v28 = vunpack.i.h.bf16 %v685_v27  ;;  %v686_v29 = vunpack.i.l.bf16 %v685_v27  ;;  %v697_v43 = vunpack.i.h.bf16 %v857_v26  ;;  %v696_v44 = vunpack.i.l.bf16 %v857_v26  ;;  %v745_v17 = vpop.permute.xlu2 %744 }
  0x99   : > { %v746_v21 = vunpack.i.l.bf16 %v745_v17 }
  0x9a   : > { %v423_v30 = vsel %vm421_vm0, %v677_v19, %v686_v29  ;;  %v424_v31 = vsel %vm421_vm0, %v686_v29, %v687_v28  ;;  %v394_v55 = vsel %vm391_vm3, %v696_v44, %v697_v43  ;;  %v393_v24 = vsel %vm391_vm3, %v717_v8, %v696_v44 }
  0x9b   : > { %v449_v33 = vpack.c.bf16 %v423_v30, %v423_v30  ;;  %v450_v34 = vpack.c.bf16 %v424_v31, %v424_v31  ;;  %v440_v1 = vsel %vm428_vm4, %v394_v55, %v409_v49 }
  0x9d   : > { %v466_v35 = vsel %vm461_vm1, %v449_v33, 0  ;;  %v469_v36 = vsel %vm461_vm1, %v450_v34, 0 }
  0x9e   : > { %489 = vmatpush.bf16.msra.mxu1 %v466_v35  ;;  %502 = vmatpush.bf16.msra.mxu2 %v469_v36 }
  0x9f   : > { %v863_v37 = vpop.permute.xlu1 %699  ;;  %v690_v38 = vpop.permute.xlu0 %689 }
  0xa0   : > { %v692_v47 = vunpack.i.h.bf16 %v690_v38  ;;  %v691_v48 = vunpack.i.l.bf16 %v690_v38  ;;  %v702_v51 = vunpack.i.h.bf16 %v863_v37  ;;  %v701_v52 = vunpack.i.l.bf16 %v863_v37 }
  0xa1   : > { %v747_v37 = vunpack.i.h.bf16 %v745_v17 }
  0xa2   : > { %v364_v61 = vsel %vm361_vm9, %v691_v48, %v692_v47  ;;  %v334_v2 = vsel %vm331_vm7, %v701_v52, %v702_v51  ;;  %v363_v23 = vsel %vm361_vm9, %v682_v10, %v691_v48 }
  0xa3   : > { %v434_v12 = vsel %vm428_vm4, %v334_v2, %v349_v3  ;;  %v332_v32 = vsel %vm331_vm7, %v746_v21, %v747_v37  ;;  %v333_v44 = vsel %vm331_vm7, %v747_v37, %v701_v52 }
  0xa7   : > { %v881_v53 = vpop.permute.xlu0 %724  ;;  %v705_v54 = vpop.permute.xlu1 %704 }
  0xa8   : > { %v727_v56 = vunpack.i.h.bf16 %v881_v53  ;;  %v726_v57 = vunpack.i.l.bf16 %v881_v53  ;;  %v707_v58 = vunpack.i.h.bf16 %v705_v54  ;;  %v706_v59 = vunpack.i.l.bf16 %v705_v54 }
  0xaa   : > { %v379_v62 = vsel %vm376_vm5, %v706_v59, %v707_v58  ;;  %v319_v63 = vsel %vm316_vm6, %v726_v57, %v727_v56 }
  0xab   : > { %v437_v0 = vsel %vm428_vm4, %v364_v61, %v379_v62  ;;  %v431_v5 = vsel %vm428_vm4, %v846_v9, %v319_v63 }
  0xac   : > { %v447_v4 = vpack.c.bf16 %v440_v1, %v437_v0  ;;  %v444_v15 = vpack.c.bf16 %v434_v12, %v431_v5 }
  0xae   : > { %503 = vmatpush.bf16.msra.mxu2 %v447_v4 }
  0xaf   : > { %v730_v13 = vpop.permute.xlu0 %729  ;;  %v710_v14 = vpop.permute.xlu1 %709 }
  0xb0   : > { %v732_v18 = vunpack.i.h.bf16 %v730_v13  ;;  %v731_v19 = vunpack.i.l.bf16 %v730_v13  ;;  %v712_v20 = vunpack.i.h.bf16 %v710_v14  ;;  %v711_v9 = vunpack.i.l.bf16 %v710_v14 }
  0xb2   : > { %504 = vmatpush.bf16.msra.mxu2 %v444_v15  ;;  %v377_v26 = vsel %vm376_vm5, %v711_v9, %v712_v20  ;;  %v407_v27 = vsel %vm406_vm2, %v731_v19, %v732_v18  ;;  %v378_v28 = vsel %vm376_vm5, %v712_v20, %v706_v59  ;;  %v408_v29 = vsel %vm406_vm2, %v732_v18, %v721_v41 }
  0xb3   : > { %v435_v30 = vsel %vm428_vm4, %v362_v22, %v377_v26  ;;  %v438_v31 = vsel %vm428_vm4, %v392_v16, %v407_v27  ;;  %v436_v33 = vsel %vm428_vm4, %v363_v23, %v378_v28  ;;  %v439_v34 = vsel %vm428_vm4, %v393_v24, %v408_v29 }
  0xb4   : > { %v445_v35 = vpack.c.bf16 %v438_v31, %v435_v30  ;;  %v446_v36 = vpack.c.bf16 %v439_v34, %v436_v33 }
  0xb5   : > { %631 = vmatmul.msk.bf16.vlgmr.msra.gmra.mxu2 %vm457_vm10, %v441_v25 }
  0xb6   : > { %477 = vmatpush.bf16.msra.mxu0 %v445_v35  ;;  %490 = vmatpush.bf16.msra.mxu1 %v446_v36 }
  0xb7   : > { %v750_v38 = vpop.permute.xlu0 %749  ;;  %v735_v39 = vpop.permute.xlu1 %734 }
  0xb8   : > { %v752_v40 = vunpack.i.h.bf16 %v750_v38  ;;  %v751_v41 = vunpack.i.l.bf16 %v750_v38  ;;  %v737_v42 = vunpack.i.h.bf16 %v735_v39  ;;  %v736_v43 = vunpack.i.l.bf16 %v735_v39 }
  0xba   : > { %v317_v46 = vsel %vm316_vm6, %v736_v43, %v737_v42  ;;  %v347_v47 = vsel %vm346_vm8, %v751_v41, %v752_v40  ;;  %v318_v48 = vsel %vm316_vm6, %v737_v42, %v726_v57  ;;  %v348_v49 = vsel %vm346_vm8, %v752_v40, %v741_v50 }
  0xbb   : > { %v429_v51 = vsel %vm428_vm4, %v840_v6, %v317_v46  ;;  %v432_v53 = vsel %vm428_vm4, %v332_v32, %v347_v47  ;;  %v430_v54 = vsel %vm428_vm4, %v842_v7, %v318_v48  ;;  %v433_v52 = vsel %vm428_vm4, %v333_v44, %v348_v49 }
  0xbc   : > { %v442_v55 = vpack.c.bf16 %v432_v53, %v429_v51  ;;  %v443_v56 = vpack.c.bf16 %v433_v52, %v430_v54 }
  0xbe   : > { %478 = vmatpush.bf16.msra.mxu0 %v442_v55  ;;  %491 = vmatpush.bf16.msra.mxu1 %v443_v56 }
  0xbf   : > { %v455_v45 = vpop.permute.xlu1 %454 }
  0xc1   : > { %629 = vmatmul.msk.bf16.vlgmr.msra.gmra.mxu0 %vm457_vm10, %v441_v25  ;;  %630 = vmatmul.msk.bf16.vlgmr.msra.gmra.mxu1 %vm457_vm10, %v441_v25 }
 0x138   : > { %v506_v50 = vpop.f32.mrf.mxu2 }
 0x139   : > { %v507_v57 = vadd.f32 %v506_v50, %v455_v45 }
 0x13b   : > { %v512_v6 = vmax.f32 %v507_v57, 0.0 }
 0x13d   : > { %515 = vst [vmem:[%s278_s20 + $0x10] sm:$0xff] %v512_v6 }
 0x13e   : > { %v480_v7 = vpop.f32.mrf.mxu0  ;;  %v493_v58 = vpop.f32.mrf.mxu1 }
 0x13f   : > { %v481_v59 = vadd.f32 %v480_v7, %v455_v45  ;;  %v494_v60 = vadd.f32 %v493_v58, %v455_v45 }
 0x140   : > { %v508_v61 = vpop.f32.mrf.mxu2 }
 0x141   : > { %v510_v62 = vmax.f32 %v481_v59, 0.0  ;;  %v511_v63 = vmax.f32 %v494_v60, 0.0 }
 0x143   : > { %513 = vst [vmem:[%s278_s20] sm:$0xff] %v510_v62 }
 0x144   : > { %514 = vst [vmem:[%s278_s20 + $0x8] sm:$0xff] %v511_v63 }
 0x146   : > { %v482_v0 = vpop.f32.mrf.mxu0  ;;  %v495_v1 = vpop.f32.mrf.mxu1 }
 0x147 PF: > { %s14_s17 = sadd.s32 1, %s777_s17   ;;  %s954_s15 = smov %s773_s16 }
 0x148   : > { %p11_p5 = scmp.ge.s32.totalorder %s14_s17, 4   ;;  %s955_s16 = smov %s957_s18 }
 0x14a   :  { %13 = sbr.rel (!%p11_p5) target bundleno = 2 (0x2), region = 71 }

</bundles_post_ra>
